<compile_context>
chip_gen: v7x
topology: tpu7x:2x2x1
jax: 0.10.0
libtpu: 0.0.40
codegen_flags: <defaults>
</compile_context>

<pallas_src>
import functools

import jax
import jax.numpy as jnp
from jax import lax
from jax.experimental import pallas as pl
from jax.experimental.pallas import tpu as pltpu


def _index_copy_kernel(idx_ref, x_ref, src_ref, o_ref, *, tb, n_idx):
    # idx_ref : SMEM (n_idx,) int32   scalar-prefetched row indices
    # x_ref   : VMEM (tb, j)          current row-tile of x
    # src_ref : VMEM (n_idx, j)       source rows (resident full block)
    # o_ref   : VMEM (tb, j)          current row-tile of the output
    row_start = pl.program_id(0) * tb
    # Global row id of each sublane of this tile, shape (tb, 1); the lane
    # broadcast happens inside jnp.where (cheaper than a full (tb, j) iota).
    rows = lax.broadcasted_iota(jnp.int32, (tb, 1), 0) + row_start

    out = x_ref[...]
    for k in range(n_idx):  # n_idx is static and tiny (1 for this module)
        hit = rows == idx_ref[k]                     # (tb, 1) mask, SMEM scalar
        src_row = src_ref[pl.ds(k, 1), :]            # (1, j) -> broadcasts
        out = jnp.where(hit, src_row.astype(out.dtype), out)
    o_ref[...] = out


def _pick_row_tile(i, tb_max):
    """Largest sublane-aligned (multiple of 8) divisor of i, capped at tb_max."""
    if i % 8 != 0:
        return i                      # full-extent block is always legal
    tb = min(tb_max, i)
    tb -= tb % 8
    while tb > 8 and i % tb != 0:
        tb -= 8
    return tb if i % tb == 0 else i


def index_copy_forward(x, indices, source, *, tb_max=512):
    """index_copy along dim 0.

    x       : [i, j]
    indices : [n_idx] int   (rows of x to overwrite)
    source  : [n_idx, j]    (replacement rows)
    returns : [i, j] = x with x[indices[k]] := source[k]
    """
    i, j = x.shape
    n_idx = source.shape[0]
    indices = indices.astype(jnp.int32)

    tb = _pick_row_tile(i, tb_max)
    grid = (i // tb,)

    kernel = functools.partial(_index_copy_kernel, tb=tb, n_idx=n_idx)

    return pl.pallas_call(
        kernel,
        out_shape=jax.ShapeDtypeStruct((i, j), x.dtype),
        grid_spec=pltpu.PrefetchScalarGridSpec(
            num_scalar_prefetch=1,                       # indices -> SMEM
            grid=grid,
            in_specs=[
                pl.BlockSpec((tb, j), lambda b, idx: (b, 0)),      # x row-tile
                pl.BlockSpec((n_idx, j), lambda b, idx: (0, 0)),   # source rows
            ],
            out_specs=pl.BlockSpec((tb, j), lambda b, idx: (b, 0)),
        ),
        compiler_params=pltpu.CompilerParams(
            dimension_semantics=("parallel",),           # independent row tiles
        ),
    )(indices, x, source)


def reference_forward(x, indices, source):
    """Pure-JAX reference mirroring torch.Tensor.index_copy_(0, ...)."""
    return x.at[indices].set(source)


if __name__ == "__main__":
    # Small shapes consistent with IndexCopyModule(i, j):
    # j lane-dense (multiple of 128) and rows sublane-aligned.
    i, j = 32, 128

    key = jax.random.PRNGKey(0)
    x = jax.random.normal(key, (i, j), dtype=jnp.float32)

    # Module buffers: copy_tensor = ones((1, j)), indices = [0]
    indices = jnp.array([0], dtype=jnp.int32)
    copy_tensor = jnp.ones((1, j), dtype=jnp.float32)

    out = index_copy_forward(x, indices, copy_tensor)
    out = jax.block_until_ready(out)

    ref = reference_forward(x, indices, copy_tensor)
    assert out.shape == (i, j)
    assert jnp.array_equal(out, ref), "mismatch vs reference"
    assert bool(jnp.all(out[0] == 1.0))             # row 0 overwritten with ones
    assert jnp.array_equal(out[1:], x[1:])          # all other rows untouched

    print("KERNEL_OK")
</pallas_src>

<mosaic_0001>
module attributes {stable_mosaic.version = 11 : i64} {
  func.func @_index_copy_kernel(%arg0: i32, %arg1: memref<1xi32, #tpu.memory_space<smem>>, %arg2: memref<32x128xf32, #tpu.memory_space<vmem>>, %arg3: memref<1x128xf32, #tpu.memory_space<vmem>>, %arg4: memref<32x128xf32, #tpu.memory_space<vmem>>) attributes {dimension_semantics = [#tpu.dimension_semantics<parallel>], iteration_bounds = array<i64: 1>, scalar_prefetch = 1 : i64, scratch_operands = 0 : i64, tpu.core_type = #tpu.core_type<tc>, window_params = [{transform_indices = @transform_0, window_bounds = array<i64: 32, 128>}, {pipeline_mode = #tpu.pipeline_mode<synchronous>, transform_indices = @transform_1, window_bounds = array<i64: 1, 128>}, {transform_indices = @transform_2, window_bounds = array<i64: 32, 128>}]} {
    %c32_i32 = arith.constant 32 : i32
    %0 = arith.muli %arg0, %c32_i32 : i32
    %1 = tpu.iota {dimensions = array<i32: 0>} : vector<32x1xi32>
    %2 = vector.broadcast %0 : i32 to vector<32x1xi32>
    %3 = arith.addi %1, %2 : vector<32x1xi32>
    %c0 = arith.constant 0 : index
    %c0_0 = arith.constant 0 : index
    %4 = vector.load %arg2[%c0, %c0_0] : memref<32x128xf32, #tpu.memory_space<vmem>>, vector<32x128xf32>
    %c0_1 = arith.constant 0 : index
    %5 = memref.load %arg1[%c0_1] : memref<1xi32, #tpu.memory_space<smem>>
    %6 = vector.broadcast %5 : i32 to vector<32x1xi32>
    %7 = arith.cmpi eq, %3, %6 : vector<32x1xi32>
    %c0_2 = arith.constant 0 : index
    %c0_3 = arith.constant 0 : index
    %8 = vector.load %arg3[%c0_2, %c0_3] : memref<1x128xf32, #tpu.memory_space<vmem>>, vector<1x128xf32>
    %9 = vector.shape_cast %7 : vector<32x1xi1> to vector<32x1xi1>
    %10 = vector.broadcast %9 : vector<32x1xi1> to vector<32x128xi1>
    %11 = vector.shape_cast %8 : vector<1x128xf32> to vector<1x128xf32>
    %12 = vector.broadcast %11 : vector<1x128xf32> to vector<32x128xf32>
    %13 = arith.select %10, %12, %4 : vector<32x128xi1>, vector<32x128xf32>
    %c0_4 = arith.constant 0 : index
    %c0_5 = arith.constant 0 : index
    %14 = vector.load %arg4[%c0_4, %c0_5] : memref<32x128xf32, #tpu.memory_space<vmem>>, vector<32x128xf32>
    tpu.vector_store %arg4[%c0_4, %c0_5], %13 {strides = array<i32>} : memref<32x128xf32, #tpu.memory_space<vmem>>, vector<32x128xf32>,
    return
  }
  func.func @transform_0(%arg0: i32, %arg1: memref<1xi32, #tpu.memory_space<smem>>) -> (i32, i32) {
    %c0_i32 = arith.constant 0 : i32
    %c0_i32_0 = arith.constant 0 : i32
    return %arg0, %c0_i32 : i32, i32
  }
  func.func @transform_1(%arg0: i32, %arg1: memref<1xi32, #tpu.memory_space<smem>>) -> (i32, i32) {
    %c0_i32 = arith.constant 0 : i32
    %c0_i32_0 = arith.constant 0 : i32
    %c0_i32_1 = arith.constant 0 : i32
    return %c0_i32, %c0_i32_0 : i32, i32
  }
  func.func @transform_2(%arg0: i32, %arg1: memref<1xi32, #tpu.memory_space<smem>>) -> (i32, i32) {
    %c0_i32 = arith.constant 0 : i32
    %c0_i32_0 = arith.constant 0 : i32
    return %arg0, %c0_i32 : i32, i32
  }
}

</mosaic_0001>

<bundles_post_ra>
// kernel: tpu_custom_call.1
= control target key start
LH: loop header
LB: loop body
LE: loop exit
PB: predicated region body
PF: predicated region fallthrough
CT: control target
= control target key end

     0   :  { %9 = vsyncpa [#allocation5], 0  ;;  %s202_s0 = inlined_call_operand.<no memory space> [shape: s32[1], index: 0, kind: input, shape index: {}]   ;;  %s203_s1 = inlined_call_operand.hbm [shape: f32[32,128], index: 1, kind: input, shape index: {}]   ;;  %s204_s2 = inlined_call_operand.vmem [shape: f32[1,128], index: 2, kind: input, shape index: {}]   ;;  %s205_s3 = inlined_call_operand.hbm [shape: f32[32,128], index: 3, kind: output, shape index: {}]  }
   0x1   :  { %10 = vsyncpa [#allocation6], 0  ;;  %s142_s12 = smov [#allocation4]   ;;  %s94_s16 = scalar_lea.hbm %s203_s1, 512 }
   0x2   :  { %s16_s13 = sshll.u32 %s142_s12, 4  ;;  %p95_p0 = scmp.ne.s32.totalorder %s203_s1, %s94_s16  ;;  %s17_s13 = int_to_ptr.vmem [resolvable:$true] %s16_s13 }
   0x3   :  { %p98_p1 = scmp.lt.u32.totalorder %s94_s16, %s203_s1 }
   0x5   :  { %p100_p2 = pnand %p98_p1, %p95_p0 }
   0x7   :  { %103 = shalt.err (!%p100_p2)
}
   0x8   :  { %s104_s21 = scalar_lea.vmem %s17_s13, 512  ;;  %p109_p4 = scmp.lt.s32.totalorder %s17_s13, %s17_s13 }
   0x9   :  { %p105_p3 = scmp.ne.s32.totalorder %s17_s13, %s104_s21  ;;  %p110_p5 = scmp.lt.s32.totalorder %s104_s21, %s104_s21 }
   0xb   :  { %p111_p6 = por %p110_p5, %p109_p4 }
   0xd   :  { %p112_p7 = pnand %p111_p6, %p105_p3 }
   0xf   :  { %115 = shalt.err (!%p112_p7)
}
  0x10   :  { %s143_s22 = smov 128   ;;  %s144_s23 = smov 8  }
  0x11   :  { %22 = dma.hbm_to_vmem [thread:$0]  %s203_s1, 512, %s17_s13, [#allocation5], %s143_s22, %s143_s22, %s144_s23  }
  0x12   :  { %138 = dma.done.wait [#allocation5], 512  }
  0x13   :  { %139 = vsyncadd [#allocation5], 4294966784  ;;  %v29_v0 = vlaneseq  ;;  %v44_v2 = vstv %s202_s0  ;;  %s145_s28 = smov [#allocation7]   ;;  %v39_v6 = vld [vmem:[#allocation4] sm:$0xff]  ;;  %v40_v8 = vld [vmem:[#allocation4 + $0x8] sm:$0xff] }
  0x14   :  { %s77_s29 = sshll.u32 %s145_s28, 4  ;;  %v89_v7 = vld [vmem:[%s204_s2] ss:$0 sm:$0xff]  ;;  %v41_v11 = vld [vmem:[#allocation4 + $0x10] sm:$0xff]  ;;  %v42_v12 = vld [vmem:[#allocation4 + $0x18] sm:$0xff]  ;;  %s78_s29 = int_to_ptr.vmem [resolvable:$true] %s77_s29 }
  0x15   :  { %v30_v1 = vshrl.u32 %v29_v0, 7  ;;  %s116_s0 = scalar_lea.vmem %s78_s29, 512  ;;  %p121_p9 = scmp.lt.s32.totalorder %s78_s29, %s78_s29 }
  0x16   :  { %p117_p8 = scmp.ne.s32.totalorder %s78_s29, %s116_s0  ;;  %p122_p10 = scmp.lt.s32.totalorder %s116_s0, %s116_s0 }
  0x17   :  { %v31_v3 = vadd.s32 8, %v30_v1  ;;  %v32_v4 = vadd.s32 16, %v30_v1  ;;  %v33_v5 = vadd.s32 24, %v30_v1  ;;  %vm45_vm0 = vcmp.eq.s32.totalorder %v30_v1, %v44_v2 }
  0x18   :  { %v64_v9 = vsel %vm45_vm0, %v89_v7, %v39_v6  ;;  %p123_p11 = por %p122_p10, %p121_p9 }
  0x19   :  { %vm46_vm1 = vcmp.eq.s32.totalorder %v31_v3, %v44_v2  ;;  %vm47_vm2 = vcmp.eq.s32.totalorder %v32_v4, %v44_v2  ;;  %vm48_vm3 = vcmp.eq.s32.totalorder %v33_v5, %v44_v2  ;;  %68 = vst [vmem:[#allocation7] sm:$0xff] %v64_v9 }
  0x1a   :  { %v65_v10 = vsel %vm46_vm1, %v89_v7, %v40_v8  ;;  %v66_v13 = vsel %vm47_vm2, %v89_v7, %v41_v11  ;;  %v67_v14 = vsel %vm48_vm3, %v89_v7, %v42_v12  ;;  %p124_p12 = pnand %p123_p11, %p117_p8 }
  0x1b   :  { %69 = vst [vmem:[#allocation7 + $0x8] sm:$0xff] %v65_v10  ;;  %70 = vst [vmem:[#allocation7 + $0x10] sm:$0xff] %v66_v13 }
  0x1c   :  { %71 = vst [vmem:[#allocation7 + $0x18] sm:$0xff] %v67_v14 }
  0x1d   :  { %127 = shalt.err (!%p124_p12)
}
  0x1e   :  { %s128_s5 = scalar_lea.hbm %s205_s3, 512 }
  0x1f   :  { %p129_p13 = scmp.ne.s32.totalorder %s205_s3, %s128_s5  ;;  %p132_p0 = scmp.lt.u32.totalorder %s128_s5, %s205_s3 }
  0x21   :  { %p134_p1 = pnand %p132_p0, %p129_p13 }
  0x23   :  { %137 = shalt.err (!%p134_p1)
}
  0x24   :  { %83 = dma.vmem_to_hbm [thread:$0]  %s78_s29, 512, %s205_s3, [#allocation6], %s143_s22, %s143_s22, %s144_s23  }
  0x25   :  { %140 = dma.done.wait [#allocation6], 512  }
  0x26   :  { %141 = vsyncadd [#allocation6], 4294966784 }
  0x27   :  { %87 = vsyncpa [#allocation5], 1 }
  0x28   :  { %88 = vsyncpa [#allocation6], 1 }

</bundles_post_ra>
